<compile_context>
chip_gen: v6e
topology: v6e:2x2x1
jax: 0.10.0
libtpu: 0.0.40
codegen_flags: <defaults>
</compile_context>

<pallas_src>
import jax
import jax.numpy as jnp
from jax import lax
from jax.experimental import pallas as pl
from jax.experimental.pallas import tpu as pltpu


def _tree_kernel(x_ref, w_ref, b_ref, o_ref):
    """Apply all N DecisionTreeNodes to one (tm, H) row tile.

    x_ref: (tm, H)      input tile (native dtype)
    w_ref: (N, H, H)    all node weights, bf16, resident in VMEM
    b_ref: (N, 1, H)    all node biases, f32, resident in VMEM
    o_ref: (tm, H)      output tile
    """
    num_nodes = w_ref.shape[0]

    # Running state in bf16: halves per-node VMEM load/store traffic when the
    # (tm, H) state spills out of vregs and feeds the MXU without per-node casts.
    state0 = x_ref[...].astype(jnp.bfloat16)

    def node_body(n, s):
        # Decision logits: s @ W[n] + b[n]  (bf16 MXU matmul, f32 accumulate).
        z = jnp.dot(s, w_ref[n], preferred_element_type=jnp.float32) + b_ref[n]
        # sigmoid(z) = 0.5 * tanh(0.5 * z) + 0.5  ->  single EUP transcendental
        # per element per node (the two extra VPU ops are free in the 4 VALU slots).
        gate = 0.5 * jnp.tanh(0.5 * z) + 0.5
        return gate.astype(jnp.bfloat16) * s          # soft decision gating

    state = lax.fori_loop(0, num_nodes, node_body, state0, unroll=True)
    o_ref[...] = state.astype(o_ref.dtype)


def _choose_tile(m, cap=2048, min_steps=4):
    """Pick (tm, m_padded): a power-of-two row tile (multiple of 8, <= cap).

    Grows the tile while still leaving >= min_steps grid steps, so the
    BlockSpec pipeline overlaps DMA with compute and a v7x chip's two
    TensorCores both get work; the cap amortizes the ~0.35 us per-step
    overhead at large M.  M is padded up to a tile multiple (never a single
    giant unaligned block).
    """
    m8 = ((m + 7) // 8) * 8                       # sublane-align
    tm = 8
    while tm * 2 <= cap and tm * 2 * min_steps <= m8:
        tm *= 2
    m_pad = ((m8 + tm - 1) // tm) * tm
    return tm, m_pad


def _dimension_semantics(num_steps):
    """CORE_PARALLEL on v7x (2 TCs/chip, even grid); plain parallel elsewhere."""
    try:
        kind = jax.devices()[0].device_kind.lower()
    except Exception:  # pragma: no cover
        kind = ""
    if "v7" in kind and num_steps % 2 == 0:
        return (pltpu.CORE_PARALLEL,)
    return ("parallel",)


def prepare_params(W, b):
    """One-time parameter prep (hoisted off the per-call hot path).

    W: (N, H, H) -> bf16 (half the HBM/VMEM bytes, fast MXU path)
    b: (N, H)    -> (N, 1, H) f32
    """
    N, H, _ = W.shape
    return W.astype(jnp.bfloat16), b.reshape(N, 1, H).astype(jnp.float32)


@jax.jit
def decision_tree_layer(x, w_bf16, b3d):
    """x: (B, S, H); w_bf16: (N, H, H) bf16; b3d: (N, 1, H) f32. Returns (B, S, H)."""
    B, S, H = x.shape
    N = w_bf16.shape[0]
    M = B * S
    tm, m_pad = _choose_tile(M)
    num_steps = m_pad // tm

    x2d = x.reshape(M, H)
    if m_pad != M:
        # Zero pad rows: gate * 0 = 0 through every node; sliced off below.
        x2d = jnp.pad(x2d, ((0, m_pad - M), (0, 0)))

    cost = pl.CostEstimate(
        flops=2 * N * M * H * H,
        transcendentals=N * M * H,                     # one tanh per element/node
        bytes_accessed=2 * M * H * x.dtype.itemsize + N * H * H * 2 + N * H * 4,
    )

    out = pl.pallas_call(
        _tree_kernel,
        out_shape=jax.ShapeDtypeStruct((m_pad, H), x.dtype),
        grid_spec=pltpu.PrefetchScalarGridSpec(
            num_scalar_prefetch=0,
            grid=(num_steps,),
            in_specs=[
                # Row tile of the input (native dtype stream from HBM).
                pl.BlockSpec((tm, H), lambda i: (i, 0)),
                # All node weights, resident (constant index_map -> fetched once).
                # TODO(synk): pipeline_mode=pl.Buffered(1) would drop the dead
                #             second buffer (minor VMEM hygiene) once validated.
                pl.BlockSpec((N, H, H), lambda i: (0, 0, 0)),
                # All node biases, resident.
                pl.BlockSpec((N, 1, H), lambda i: (0, 0, 0)),
            ],
            out_specs=pl.BlockSpec((tm, H), lambda i: (i, 0)),
        ),
        compiler_params=pltpu.CompilerParams(
            dimension_semantics=_dimension_semantics(num_steps),
        ),
        cost_estimate=cost,
    )(x2d, w_bf16, b3d)
    return out[:M].reshape(B, S, H)


def decision_tree_layer_ref(x, W, b):
    """Pure-JAX reference (f32 state, bf16 matmul inputs, exact sigmoid)."""
    B, S, H = x.shape
    s = x.reshape(B * S, H).astype(jnp.float32)
    for n in range(W.shape[0]):
        z = jnp.dot(
            s.astype(jnp.bfloat16),
            W[n].astype(jnp.bfloat16),
            preferred_element_type=jnp.float32,
        ) + b[n]
        s = jax.nn.sigmoid(z) * s
    return s.reshape(B, S, H).astype(x.dtype)


if __name__ == "__main__":
    # Config implied by the module: hidden size + num_tree_layers (small shapes).
    batch, seq, hidden = 2, 16, 32
    num_tree_layers = 3
    num_nodes = 2 ** num_tree_layers - 1   # 7 DecisionTreeNodes

    key = jax.random.PRNGKey(0)
    kx, kw, kb = jax.random.split(key, 3)

    x = jax.random.normal(kx, (batch, seq, hidden), dtype=jnp.float32)
    # Deterministic synthetic parameters (one Linear(hidden, hidden) per node).
    W = jax.random.normal(kw, (num_nodes, hidden, hidden), dtype=jnp.float32) * 0.05
    b = jax.random.normal(kb, (num_nodes, hidden), dtype=jnp.float32) * 0.05

    # One-time parameter cast/reshape, hoisted off the per-call hot path.
    w_bf16, b3d = prepare_params(W, b)

    out = decision_tree_layer(x, w_bf16, b3d)
    out = jax.block_until_ready(out)

    ref = decision_tree_layer_ref(x, W, b)
    assert out.shape == (batch, seq, hidden)
    assert jnp.allclose(out, ref, atol=2e-2, rtol=2e-2), "mismatch vs reference"

    print("KERNEL_OK")
</pallas_src>

<mosaic_0001>
module attributes {stable_mosaic.version = 11 : i64} {
  func.func @_tree_kernel(%arg0: i32, %arg1: memref<8x32xf32, #tpu.memory_space<vmem>>, %arg2: memref<7x32x32xbf16, #tpu.memory_space<vmem>>, %arg3: memref<7x1x32xf32, #tpu.memory_space<vmem>>, %arg4: memref<8x32xf32, #tpu.memory_space<vmem>>) attributes {dimension_semantics = [#tpu.dimension_semantics<parallel>], iteration_bounds = array<i64: 4>, scalar_prefetch = 0 : i64, scratch_operands = 0 : i64, tpu.core_type = #tpu.core_type<tc>, window_params = [{transform_indices = @transform_0, window_bounds = array<i64: 8, 32>}, {pipeline_mode = #tpu.pipeline_mode<synchronous>, transform_indices = @transform_1, window_bounds = array<i64: 7, 32, 32>}, {pipeline_mode = #tpu.pipeline_mode<synchronous>, transform_indices = @transform_2, window_bounds = array<i64: 7, 1, 32>}, {transform_indices = @transform_3, window_bounds = array<i64: 8, 32>}]} {
    %c0 = arith.constant 0 : index
    %c0_0 = arith.constant 0 : index
    %0 = vector.load %arg1[%c0, %c0_0] : memref<8x32xf32, #tpu.memory_space<vmem>>, vector<8x32xf32>
    %1 = arith.truncf %0 : vector<8x32xf32> to vector<8x32xbf16>
    %c0_i32 = arith.constant 0 : i32
    %2 = arith.index_cast %c0_i32 : i32 to index
    %c0_1 = arith.constant 0 : index
    %c0_2 = arith.constant 0 : index
    %3 = vector.load %arg2[%2, %c0_1, %c0_2] : memref<7x32x32xbf16, #tpu.memory_space<vmem>>, vector<1x32x32xbf16>
    %4 = vector.shape_cast %3 : vector<1x32x32xbf16> to vector<32x32xbf16>
    %cst = arith.constant dense<0.000000e+00> : vector<8x32xf32>
    %5 = tpu.matmul %1, %4, %cst {dimension_numbers = #tpu.dot_dimension_numbers<[1], [0], [0], [1], [0, 0, 1, 1], [], []>} : vector<8x32xbf16>, vector<32x32xbf16>, vector<8x32xf32> -> vector<8x32xf32>
    %6 = arith.index_cast %c0_i32 : i32 to index
    %c0_3 = arith.constant 0 : index
    %c0_4 = arith.constant 0 : index
    %7 = vector.load %arg3[%6, %c0_3, %c0_4] : memref<7x1x32xf32, #tpu.memory_space<vmem>>, vector<1x1x32xf32>
    %8 = vector.shape_cast %7 : vector<1x1x32xf32> to vector<1x32xf32>
    %9 = vector.broadcast %8 : vector<1x32xf32> to vector<8x32xf32>
    %10 = arith.addf %5, %9 : vector<8x32xf32>
    %cst_5 = arith.constant 5.000000e-01 : f32
    %11 = vector.broadcast %cst_5 : f32 to vector<8x32xf32>
    %12 = arith.mulf %11, %10 : vector<8x32xf32>
    %13 = math.tanh %12 : vector<8x32xf32>
    %cst_6 = arith.constant 5.000000e-01 : f32
    %14 = vector.broadcast %cst_6 : f32 to vector<8x32xf32>
    %15 = arith.mulf %14, %13 : vector<8x32xf32>
    %cst_7 = arith.constant 5.000000e-01 : f32
    %16 = vector.broadcast %cst_7 : f32 to vector<8x32xf32>
    %17 = arith.addf %15, %16 : vector<8x32xf32>
    %18 = arith.truncf %17 : vector<8x32xf32> to vector<8x32xbf16>
    %19 = arith.mulf %18, %1 : vector<8x32xbf16>
    %c1_i32 = arith.constant 1 : i32
    %20 = arith.index_cast %c1_i32 : i32 to index
    %c0_8 = arith.constant 0 : index
    %c0_9 = arith.constant 0 : index
    %21 = vector.load %arg2[%20, %c0_8, %c0_9] : memref<7x32x32xbf16, #tpu.memory_space<vmem>>, vector<1x32x32xbf16>
    %22 = vector.shape_cast %21 : vector<1x32x32xbf16> to vector<32x32xbf16>
    %cst_10 = arith.constant dense<0.000000e+00> : vector<8x32xf32>
    %23 = tpu.matmul %19, %22, %cst_10 {dimension_numbers = #tpu.dot_dimension_numbers<[1], [0], [0], [1], [0, 0, 1, 1], [], []>} : vector<8x32xbf16>, vector<32x32xbf16>, vector<8x32xf32> -> vector<8x32xf32>
    %24 = arith.index_cast %c1_i32 : i32 to index
    %c0_11 = arith.constant 0 : index
    %c0_12 = arith.constant 0 : index
    %25 = vector.load %arg3[%24, %c0_11, %c0_12] : memref<7x1x32xf32, #tpu.memory_space<vmem>>, vector<1x1x32xf32>
    %26 = vector.shape_cast %25 : vector<1x1x32xf32> to vector<1x32xf32>
    %27 = vector.broadcast %26 : vector<1x32xf32> to vector<8x32xf32>
    %28 = arith.addf %23, %27 : vector<8x32xf32>
    %cst_13 = arith.constant 5.000000e-01 : f32
    %29 = vector.broadcast %cst_13 : f32 to vector<8x32xf32>
    %30 = arith.mulf %29, %28 : vector<8x32xf32>
    %31 = math.tanh %30 : vector<8x32xf32>
    %cst_14 = arith.constant 5.000000e-01 : f32
    %32 = vector.broadcast %cst_14 : f32 to vector<8x32xf32>
    %33 = arith.mulf %32, %31 : vector<8x32xf32>
    %cst_15 = arith.constant 5.000000e-01 : f32
    %34 = vector.broadcast %cst_15 : f32 to vector<8x32xf32>
    %35 = arith.addf %33, %34 : vector<8x32xf32>
    %36 = arith.truncf %35 : vector<8x32xf32> to vector<8x32xbf16>
    %37 = arith.mulf %36, %19 : vector<8x32xbf16>
    %c2_i32 = arith.constant 2 : i32
    %38 = arith.index_cast %c2_i32 : i32 to index
    %c0_16 = arith.constant 0 : index
    %c0_17 = arith.constant 0 : index
    %39 = vector.load %arg2[%38, %c0_16, %c0_17] : memref<7x32x32xbf16, #tpu.memory_space<vmem>>, vector<1x32x32xbf16>
    %40 = vector.shape_cast %39 : vector<1x32x32xbf16> to vector<32x32xbf16>
    %cst_18 = arith.constant dense<0.000000e+00> : vector<8x32xf32>
    %41 = tpu.matmul %37, %40, %cst_18 {dimension_numbers = #tpu.dot_dimension_numbers<[1], [0], [0], [1], [0, 0, 1, 1], [], []>} : vector<8x32xbf16>, vector<32x32xbf16>, vector<8x32xf32> -> vector<8x32xf32>
    %42 = arith.index_cast %c2_i32 : i32 to index
    %c0_19 = arith.constant 0 : index
    %c0_20 = arith.constant 0 : index
    %43 = vector.load %arg3[%42, %c0_19, %c0_20] : memref<7x1x32xf32, #tpu.memory_space<vmem>>, vector<1x1x32xf32>
    %44 = vector.shape_cast %43 : vector<1x1x32xf32> to vector<1x32xf32>
    %45 = vector.broadcast %44 : vector<1x32xf32> to vector<8x32xf32>
    %46 = arith.addf %41, %45 : vector<8x32xf32>
    %cst_21 = arith.constant 5.000000e-01 : f32
    %47 = vector.broadcast %cst_21 : f32 to vector<8x32xf32>
    %48 = arith.mulf %47, %46 : vector<8x32xf32>
    %49 = math.tanh %48 : vector<8x32xf32>
    %cst_22 = arith.constant 5.000000e-01 : f32
    %50 = vector.broadcast %cst_22 : f32 to vector<8x32xf32>
    %51 = arith.mulf %50, %49 : vector<8x32xf32>
    %cst_23 = arith.constant 5.000000e-01 : f32
    %52 = vector.broadcast %cst_23 : f32 to vector<8x32xf32>
    %53 = arith.addf %51, %52 : vector<8x32xf32>
    %54 = arith.truncf %53 : vector<8x32xf32> to vector<8x32xbf16>
    %55 = arith.mulf %54, %37 : vector<8x32xbf16>
    %c3_i32 = arith.constant 3 : i32
    %56 = arith.index_cast %c3_i32 : i32 to index
    %c0_24 = arith.constant 0 : index
    %c0_25 = arith.constant 0 : index
    %57 = vector.load %arg2[%56, %c0_24, %c0_25] : memref<7x32x32xbf16, #tpu.memory_space<vmem>>, vector<1x32x32xbf16>
    %58 = vector.shape_cast %57 : vector<1x32x32xbf16> to vector<32x32xbf16>
    %cst_26 = arith.constant dense<0.000000e+00> : vector<8x32xf32>
    %59 = tpu.matmul %55, %58, %cst_26 {dimension_numbers = #tpu.dot_dimension_numbers<[1], [0], [0], [1], [0, 0, 1, 1], [], []>} : vector<8x32xbf16>, vector<32x32xbf16>, vector<8x32xf32> -> vector<8x32xf32>
    %60 = arith.index_cast %c3_i32 : i32 to index
    %c0_27 = arith.constant 0 : index
    %c0_28 = arith.constant 0 : index
    %61 = vector.load %arg3[%60, %c0_27, %c0_28] : memref<7x1x32xf32, #tpu.memory_space<vmem>>, vector<1x1x32xf32>
    %62 = vector.shape_cast %61 : vector<1x1x32xf32> to vector<1x32xf32>
    %63 = vector.broadcast %62 : vector<1x32xf32> to vector<8x32xf32>
    %64 = arith.addf %59, %63 : vector<8x32xf32>
    %cst_29 = arith.constant 5.000000e-01 : f32
    %65 = vector.broadcast %cst_29 : f32 to vector<8x32xf32>
    %66 = arith.mulf %65, %64 : vector<8x32xf32>
    %67 = math.tanh %66 : vector<8x32xf32>
    %cst_30 = arith.constant 5.000000e-01 : f32
    %68 = vector.broadcast %cst_30 : f32 to vector<8x32xf32>
    %69 = arith.mulf %68, %67 : vector<8x32xf32>
    %cst_31 = arith.constant 5.000000e-01 : f32
    %70 = vector.broadcast %cst_31 : f32 to vector<8x32xf32>
    %71 = arith.addf %69, %70 : vector<8x32xf32>
    %72 = arith.truncf %71 : vector<8x32xf32> to vector<8x32xbf16>
    %73 = arith.mulf %72, %55 : vector<8x32xbf16>
    %c4_i32 = arith.constant 4 : i32
    %74 = arith.index_cast %c4_i32 : i32 to index
    %c0_32 = arith.constant 0 : index
    %c0_33 = arith.constant 0 : index
    %75 = vector.load %arg2[%74, %c0_32, %c0_33] : memref<7x32x32xbf16, #tpu.memory_space<vmem>>, vector<1x32x32xbf16>
    %76 = vector.shape_cast %75 : vector<1x32x32xbf16> to vector<32x32xbf16>
    %cst_34 = arith.constant dense<0.000000e+00> : vector<8x32xf32>
    %77 = tpu.matmul %73, %76, %cst_34 {dimension_numbers = #tpu.dot_dimension_numbers<[1], [0], [0], [1], [0, 0, 1, 1], [], []>} : vector<8x32xbf16>, vector<32x32xbf16>, vector<8x32xf32> -> vector<8x32xf32>
    %78 = arith.index_cast %c4_i32 : i32 to index
    %c0_35 = arith.constant 0 : index
    %c0_36 = arith.constant 0 : index
    %79 = vector.load %arg3[%78, %c0_35, %c0_36] : memref<7x1x32xf32, #tpu.memory_space<vmem>>, vector<1x1x32xf32>
    %80 = vector.shape_cast %79 : vector<1x1x32xf32> to vector<1x32xf32>
    %81 = vector.broadcast %80 : vector<1x32xf32> to vector<8x32xf32>
    %82 = arith.addf %77, %81 : vector<8x32xf32>
    %cst_37 = arith.constant 5.000000e-01 : f32
    %83 = vector.broadcast %cst_37 : f32 to vector<8x32xf32>
    %84 = arith.mulf %83, %82 : vector<8x32xf32>
    %85 = math.tanh %84 : vector<8x32xf32>
    %cst_38 = arith.constant 5.000000e-01 : f32
    %86 = vector.broadcast %cst_38 : f32 to vector<8x32xf32>
    %87 = arith.mulf %86, %85 : vector<8x32xf32>
    %cst_39 = arith.constant 5.000000e-01 : f32
    %88 = vector.broadcast %cst_39 : f32 to vector<8x32xf32>
    %89 = arith.addf %87, %88 : vector<8x32xf32>
    %90 = arith.truncf %89 : vector<8x32xf32> to vector<8x32xbf16>
    %91 = arith.mulf %90, %73 : vector<8x32xbf16>
    %c5_i32 = arith.constant 5 : i32
    %92 = arith.index_cast %c5_i32 : i32 to index
    %c0_40 = arith.constant 0 : index
    %c0_41 = arith.constant 0 : index
    %93 = vector.load %arg2[%92, %c0_40, %c0_41] : memref<7x32x32xbf16, #tpu.memory_space<vmem>>, vector<1x32x32xbf16>
    %94 = vector.shape_cast %93 : vector<1x32x32xbf16> to vector<32x32xbf16>
    %cst_42 = arith.constant dense<0.000000e+00> : vector<8x32xf32>
    %95 = tpu.matmul %91, %94, %cst_42 {dimension_numbers = #tpu.dot_dimension_numbers<[1], [0], [0], [1], [0, 0, 1, 1], [], []>} : vector<8x32xbf16>, vector<32x32xbf16>, vector<8x32xf32> -> vector<8x32xf32>
    %96 = arith.index_cast %c5_i32 : i32 to index
    %c0_43 = arith.constant 0 : index
    %c0_44 = arith.constant 0 : index
    %97 = vector.load %arg3[%96, %c0_43, %c0_44] : memref<7x1x32xf32, #tpu.memory_space<vmem>>, vector<1x1x32xf32>
    %98 = vector.shape_cast %97 : vector<1x1x32xf32> to vector<1x32xf32>
    %99 = vector.broadcast %98 : vector<1x32xf32> to vector<8x32xf32>
    %100 = arith.addf %95, %99 : vector<8x32xf32>
    %cst_45 = arith.constant 5.000000e-01 : f32
    %101 = vector.broadcast %cst_45 : f32 to vector<8x32xf32>
    %102 = arith.mulf %101, %100 : vector<8x32xf32>
    %103 = math.tanh %102 : vector<8x32xf32>
    %cst_46 = arith.constant 5.000000e-01 : f32
    %104 = vector.broadcast %cst_46 : f32 to vector<8x32xf32>
    %105 = arith.mulf %104, %103 : vector<8x32xf32>
    %cst_47 = arith.constant 5.000000e-01 : f32
    %106 = vector.broadcast %cst_47 : f32 to vector<8x32xf32>
    %107 = arith.addf %105, %106 : vector<8x32xf32>
    %108 = arith.truncf %107 : vector<8x32xf32> to vector<8x32xbf16>
    %109 = arith.mulf %108, %91 : vector<8x32xbf16>
    %c6_i32 = arith.constant 6 : i32
    %110 = arith.index_cast %c6_i32 : i32 to index
    %c0_48 = arith.constant 0 : index
    %c0_49 = arith.constant 0 : index
    %111 = vector.load %arg2[%110, %c0_48, %c0_49] : memref<7x32x32xbf16, #tpu.memory_space<vmem>>, vector<1x32x32xbf16>
    %112 = vector.shape_cast %111 : vector<1x32x32xbf16> to vector<32x32xbf16>
    %cst_50 = arith.constant dense<0.000000e+00> : vector<8x32xf32>
    %113 = tpu.matmul %109, %112, %cst_50 {dimension_numbers = #tpu.dot_dimension_numbers<[1], [0], [0], [1], [0, 0, 1, 1], [], []>} : vector<8x32xbf16>, vector<32x32xbf16>, vector<8x32xf32> -> vector<8x32xf32>
    %114 = arith.index_cast %c6_i32 : i32 to index
    %c0_51 = arith.constant 0 : index
    %c0_52 = arith.constant 0 : index
    %115 = vector.load %arg3[%114, %c0_51, %c0_52] : memref<7x1x32xf32, #tpu.memory_space<vmem>>, vector<1x1x32xf32>
    %116 = vector.shape_cast %115 : vector<1x1x32xf32> to vector<1x32xf32>
    %117 = vector.broadcast %116 : vector<1x32xf32> to vector<8x32xf32>
    %118 = arith.addf %113, %117 : vector<8x32xf32>
    %cst_53 = arith.constant 5.000000e-01 : f32
    %119 = vector.broadcast %cst_53 : f32 to vector<8x32xf32>
    %120 = arith.mulf %119, %118 : vector<8x32xf32>
    %121 = math.tanh %120 : vector<8x32xf32>
    %cst_54 = arith.constant 5.000000e-01 : f32
    %122 = vector.broadcast %cst_54 : f32 to vector<8x32xf32>
    %123 = arith.mulf %122, %121 : vector<8x32xf32>
    %cst_55 = arith.constant 5.000000e-01 : f32
    %124 = vector.broadcast %cst_55 : f32 to vector<8x32xf32>
    %125 = arith.addf %123, %124 : vector<8x32xf32>
    %126 = arith.truncf %125 : vector<8x32xf32> to vector<8x32xbf16>
    %127 = arith.mulf %126, %109 : vector<8x32xbf16>
    %c7_i32 = arith.constant 7 : i32
    %128 = arith.extf %127 : vector<8x32xbf16> to vector<8x32xf32>
    %c0_56 = arith.constant 0 : index
    %c0_57 = arith.constant 0 : index
    %129 = vector.load %arg4[%c0_56, %c0_57] : memref<8x32xf32, #tpu.memory_space<vmem>>, vector<8x32xf32>
    tpu.vector_store %arg4[%c0_56, %c0_57], %128 {strides = array<i32>} : memref<8x32xf32, #tpu.memory_space<vmem>>, vector<8x32xf32>,
    return
  }
  func.func @transform_0(%arg0: i32) -> (i32, i32) {
    %c0_i32 = arith.constant 0 : i32
    %c0_i32_0 = arith.constant 0 : i32
    return %arg0, %c0_i32 : i32, i32
  }
  func.func @transform_1(%arg0: i32) -> (i32, i32, i32) {
    %c0_i32 = arith.constant 0 : i32
    %c0_i32_0 = arith.constant 0 : i32
    %c0_i32_1 = arith.constant 0 : i32
    %c0_i32_2 = arith.constant 0 : i32
    return %c0_i32, %c0_i32_0, %c0_i32_1 : i32, i32, i32
  }
  func.func @transform_2(%arg0: i32) -> (i32, i32, i32) {
    %c0_i32 = arith.constant 0 : i32
    %c0_i32_0 = arith.constant 0 : i32
    %c0_i32_1 = arith.constant 0 : i32
    %c0_i32_2 = arith.constant 0 : i32
    return %c0_i32, %c0_i32_0, %c0_i32_1 : i32, i32, i32
  }
  func.func @transform_3(%arg0: i32) -> (i32, i32) {
    %c0_i32 = arith.constant 0 : i32
    %c0_i32_0 = arith.constant 0 : i32
    return %arg0, %c0_i32 : i32, i32
  }
}

</mosaic_0001>

<bundles_post_ra>
// kernel: decision_tree_layer.1
= control target key start
LH: loop header
LB: loop body
LE: loop exit
PB: predicated region body
PF: predicated region fallthrough
CT: control target
= control target key end

     0   :  { %8 = vsyncpa [#allocation3], 0  ;;  %s1453_s0 = inlined_call_operand.hbm [shape: f32[32,32], index: 0, kind: input, shape index: {}]   ;;  %s1454_s1 = inlined_call_operand.hbm [shape: bf16[7,32,32], index: 1, kind: input, shape index: {}]   ;;  %s1455_s2 = inlined_call_operand.hbm [shape: f32[7,1,32], index: 2, kind: input, shape index: {}]   ;;  %s1456_s3 = inlined_call_operand.hbm [shape: f32[32,32], index: 3, kind: output, shape index: {}]  }
   0x1   :  { %10 = vsyncpa [#allocation3 + $0x1], 0 }
   0x2   :  { %11 = vsyncpa [#allocation6], 0 }
   0x3   :  { %12 = vsyncpa [#allocation4], 0 }
   0x4   :  { %14 = vsyncpa [#allocation4 + $0x1], 0  ;;  %s1242_s12 = smov 0   ;;  %s1244_s13 = smov 0  }
   0x5   :  { %s1246_s14 = smov 0   ;;  %s1248_s15 = smov 0  }
   0x6 LB: > { %s1263_s16 = sadd.s32 4294967295, %s1210_s15   ;;  %s840_s17 = sadd.s32 4294967294, %s1210_s15   ;;  %s1210_s15 = sphi %s1248_s15, %s1476_s15   ;;  %s1206_s14 = sphi %s1246_s14, %s1475_s14   ;;  %s1202_s13 = sphi %s1244_s13, %s1474_s13   ;;  %s1198_s12 = sphi %s1242_s12, %s1473_s12  }
   0x7   : > { %p40_p0 = scmp.ne.s32.totalorder %s1202_s13, %s1198_s12  ;;  %p1457_p1 = scmp.eq.s32.totalorder %s1263_s16, 0 }
   0x8   : > { %p106_p2 = scmp.eq.s32.totalorder %s1263_s16, 3  ;;  %p112_p3 = scmp.eq.s32.totalorder %s840_s17, 3 }
   0x9   : > { %p1272_p4 = por %p1457_p1, %p40_p0  ;;  %p841_p5 = scmp.ge.s32.totalorder %s1210_s15, 1 }
   0xa   : > { %p1277_p6 = por %p112_p3, %p40_p0  ;;  %p119_p7 = scmp.lt.s32.totalorder %s1210_s15, 5 }
   0xb   : > { %s1461_s18 = scalar_select %p1272_p4, 1, 0 }
   0xc   : > { %s1462_s19 = scalar_select %p1277_p6, 1, 0 }
   0xd   : > { %p1282_p8 = pnand %p841_p5, %p119_p7  ;;  %s1212_s21 = smov [#allocation5]  }
   0xe   : > { %s131_s22 = sshll.u32 %s1212_s21, 4  ;;  %s1213_s24 = smov [#allocation7]   ;;  %s132_s22 = int_to_ptr.vmem [resolvable:$true] %s131_s22 }
   0xf   : > { %s1463_s20 = scalar_select %p1282_p8, 1, 0 }
  0x10   : > { %p973_p9 = pneg %p1282_p8  ;;  %s144_s25 = sshll.u32 %s1213_s24, 4  ;;  %s1294_s25 = int_to_ptr.vmem [resolvable:$true] %s144_s25 }
  0x11   : > { %s1073_s26 = scalar_lea.vmem %s132_s22, 1792  ;;  %p1081_p3 = scmp.lt.s32.totalorder %s132_s22, %s132_s22 }
  0x12   : > { %p1290_p10 = pnand %p973_p9, %p1457_p1  ;;  %p1074_p12 = scmp.ne.s32.totalorder %s132_s22, %s1073_s26 }
  0x13   : > { %p1082_p5 = scmp.lt.s32.totalorder %s1073_s26, %s1073_s26 }
  0x14   : > { %p1064_p11 = pneg %p1290_p10 }
  0x15   : > { %p1083_p7 = por %p1082_p5, %p1081_p3 }
  0x16   : > { %p1076_p13 = pnand %p1074_p12, %p1064_p11 }
  0x18   : > { %p1077_p0 = pneg %p1076_p13 }
  0x1a   : > { %p1084_p9 = pnand %p1083_p7, %p1077_p0 }
  0x1c   : > { %1087 = shalt.err (!%p1084_p9)
}
  0x1d   : > { %s1214_s27 = smov 64   ;;  %s1215_s28 = smov 4  }
  0x1e   : > { %976 = dma.hbm_to_vmem [thread:$0]  (!%p1290_p10), %s1454_s1, 1792, %s132_s22, [#allocation6], %s1214_s27, %s1214_s27, %s1215_s28  }
  0x1f   : > { %s1099_s4 = scalar_lea.vmem %s1294_s25, 112  ;;  %s1106_s5 = scalar_lea.vmem %s1294_s25, 128 }
  0x20   : > { %p1100_p12 = scmp.ne.s32.totalorder %s1294_s25, %s1099_s4  ;;  %p1107_p3 = scmp.lt.s32.totalorder %s1294_s25, %s1294_s25 }
  0x21   : > { %p1108_p5 = scmp.lt.s32.totalorder %s1106_s5, %s1099_s4 }
  0x22   : > { %p1102_p13 = pnand %p1100_p12, %p1064_p11 }
  0x23   : > { %p1109_p7 = por %p1108_p5, %p1107_p3 }
  0x24   : > { %p1103_p0 = pneg %p1102_p13 }
  0x26   : > { %p1110_p9 = pnand %p1109_p7, %p1103_p0 }
  0x28   : > { %1113 = shalt.err (!%p1110_p9)
}
  0x29   : > { %s1216_s6 = smov 16   ;;  %s1217_s7 = smov 1  }
  0x2a   : > { %979 = dma.hbm_to_vmem [thread:$0]  (!%p1290_p10), %s1455_s2, 112, %s1294_s25, [#allocation6], %s1216_s6, %s1216_s6, %s1217_s7  }
  0x2b   : > { %s1321_s10 = sadd.s32 1, %s1210_s15   ;;  %s27_s17 = sadd.s32 1, %s1206_s14 }
  0x2c   : > { %s24_s11 = ssub.s32 %s1210_s15, %s1321_s10  ;;  %p34_p12 = scmp.ne.s32.totalorder %s1206_s14, %s1202_s13 }
  0x2d   : > { %p25_p11 = scmp.eq.s32.totalorder %s24_s11, 0  ;;  %p35_p13 = scmp.eq.s32.totalorder %s1210_s15, 0 }
  0x2e   : > { %p1334_p3 = por %p106_p2, %p34_p12  ;;  %p990_p5 = scmp.lt.s32.totalorder %s1210_s15, 4 }
  0x2f   : > { %s1330_s21 = scalar_select %p25_p11, %s1206_s14, %s27_s17  }
  0x30   : > { %p36_p0 = por %p35_p13, %p34_p12  ;;  %s158_s23 = sand.u32 1, %s1206_s14  }
  0x31   : > { %s1465_s22 = scalar_select %p1334_p3, 1, 0 }
  0x32   : > { %s845_s24 = sshll.u32 %s158_s23, 3  ;;  %s846_s25 = sshll.u32 %s1210_s15, 7 }
  0x33   : > { %s1344_s28 = scalar_lea.hbm %s1453_s0, %s846_s25  ;;  %s162_s29 = scalar_lea.vmem [#allocation2], %s845_s24 }
  0x34   : > { %s169_s30 = sshll.u32 %s162_s29, 4  ;;  %p1346_p10 = pnand %p990_p5, %p36_p0  ;;  %s170_s30 = int_to_ptr.vmem [resolvable:$true] %s169_s30 }
  0x35   : > { %s159_s5 = scalar_lea.sflag [#allocation3], %s158_s23  ;;  %s1114_s6 = scalar_lea.hbm %s1344_s28, 128 }
  0x36   : > { %p1115_p2 = scmp.ne.s32.totalorder %s1344_s28, %s1114_s6  ;;  %p1116_p7 = pneg %p1346_p10 }
  0x37   : > { %s1119_s9 = scalar_lea.hbm %s1453_s0, 512  ;;  %p1120_p12 = scmp.lt.s32.totalorder %s1344_s28, %s1453_s0 }
  0x38   : > { %p1117_p9 = pnand %p1116_p7, %p1115_p2  ;;  %p1121_p13 = scmp.lt.s32.totalorder %s1119_s9, %s1114_s6 }
  0x3a   : > { %p1118_p11 = pneg %p1117_p9  ;;  %p1122_p0 = por %p1121_p13, %p1120_p12 }
  0x3c   : > { %p1123_p5 = pnand %p1122_p0, %p1118_p11 }
  0x3e   : > { %1126 = shalt.err (!%p1123_p5)
}
  0x3f   : > { %s1127_s24 = scalar_lea.vmem %s170_s30, 128  ;;  %s1218_s23 = smov [#allocation2]  }
  0x40   : > { %p1128_p1 = scmp.ne.s32.totalorder %s170_s30, %s1127_s24  ;;  %s1132_s25 = sshll.u32 %s1218_s23, 4  ;;  %s1133_s25 = int_to_ptr.vmem [resolvable:$false] %s1132_s25 }
  0x41   : > { %s1134_s26 = scalar_lea.vmem %s1133_s25, 256  ;;  %p1135_p2 = scmp.lt.s32.totalorder %s170_s30, %s1133_s25 }
  0x42   : > { %p1130_p6 = pnand %p1128_p1, %p1116_p7  ;;  %p1136_p9 = scmp.lt.s32.totalorder %s1134_s26, %s1127_s24 }
  0x44   : > { %p1131_p3 = pneg %p1130_p6  ;;  %p1137_p4 = por %p1136_p9, %p1135_p2 }
  0x46   : > { %p1138_p8 = pnand %p1137_p4, %p1131_p3 }
  0x48   : > { %1141 = shalt.err (!%p1138_p8)
}
  0x49   : > { %983 = dma.hbm_to_vmem [thread:$0]  (!%p1346_p10), %s1344_s28, 128, %s170_s30, %s159_s5  }
  0x4a   : > { %p1467_p11 = scmp.ne.s32.totalorder %s1463_s20, 0 }
  0x4b   : > { %s1367_s27 = sand.u32 (!%p1467_p11), 1, %s1202_s13   ;;  %p1468_p1 = scmp.ne.s32.totalorder (!%p1467_p11), %s1461_s18, 0 }
  0x4c   : > { %178 = sbr.rel (%p1467_p11) target bundleno = 1643 (0x66b), region = 32  ;;  %s848_s29 = sshll.u32 (!%p1467_p11), %s1367_s27, 3 }
  0x4d   : > { %s181_s6 = scalar_lea.sflag (!%p1467_p11), [#allocation3], %s1367_s27  ;;  %s184_s7 = scalar_lea.vmem (!%p1467_p11), [#allocation2], %s848_s29 }
  0x51   : > { %1185 = dma.done.wait (%p1468_p1), %s181_s6, 128  }
  0x52   : > { %1187 = vsyncadd (%p1468_p1), %s181_s6, 4294967168  ;;  %p1469_p4 = scmp.eq.s32.totalorder %s1263_s16, 0 }
  0x54   : > { %1189 = dma.done.wait (%p1469_p4), [#allocation6], 1904   ;;  %p1470_p6 = pmov %p1469_p4 }
  0x55   : > { %v1219_v0 = vmov 0.0   ;;  %vm1220_vm0 = vmmov 0   ;;  %v1034_v1 = vld [vmem:[#allocation5 + $0x8] sm:$0xff]   ;;  %v1035_v2 = vld [vmem:[#allocation5] sm:$0xff]   ;;  %v216_v3 = vld [vmem:[%s184_s7] sm:$0xff]  ;;  %vm241_vm1 = vcmask 261120  }
  0x56   : > { %1191 = vsyncadd (%p1470_p6), [#allocation6], 4294965392  ;;  %905 = vmatprep.subr.bf16.mxu0 %v1219_v0  ;;  %909 = vmatprep.mubr.msk.bf16.mxu0 %vm1220_vm0, %v1219_v0  ;;  %v217_v4 = vpack.c.bf16 %v216_v3, %v216_v3  ;;  %v1036_v5 = vld [vmem:[#allocation5 + $0x18] sm:$0xff]   ;;  %v1037_v6 = vld [vmem:[#allocation5 + $0x10] sm:$0xff]   ;;  %s881_s18 = sshll.u32 %s1263_s16, 7  ;;  %s214_s20 = scalar_lea.vmem [#allocation8], %s848_s29 }
  0x57   : > { %913 = vmatprep.subr.bf16.mxu1 %v1219_v0  ;;  %917 = vmatprep.mubr.msk.bf16.mxu1 %vm1220_vm0, %v1219_v0  ;;  %v852_v7 = vld [vmem:[#allocation7] ss:$0 sm:$0xff]  ;;  %v1038_v19 = vld [vmem:[#allocation5 + $0x28] sm:$0xff]   ;;  %v1039_v20 = vld [vmem:[#allocation5 + $0x20] sm:$0xff]   ;;  %s751_s28 = sshll.u32 %s214_s20, 4  ;;  %s749_s5 = scalar_lea.hbm %s1456_s3, %s881_s18  ;;  %s752_s28 = int_to_ptr.vmem [resolvable:$true] %s751_s28 }
  0x58   : > { %906 = vmatpush3.bf16.msra.mxu0 %v1034_v1  ;;  %914 = vmatpush3.bf16.msra.mxu1 %v1036_v5  ;;  %v856_v21 = vld [vmem:[#allocation7 + $0x1] ss:$0 sm:$0xff]  ;;  %v1040_v33 = vld [vmem:[#allocation5 + $0x38] sm:$0xff]   ;;  %v860_v35 = vld [vmem:[#allocation7 + $0x2] ss:$0 sm:$0xff]  ;;  %s738_s8 = scalar_lea.sflag [#allocation4], %s1367_s27 }
  0x59   : > { %907 = vmatprep.subr.bf16.mxu0 %v1219_v0  ;;  %915 = vmatprep.subr.bf16.mxu1 %v1219_v0  ;;  %v1041_v34 = vld [vmem:[#allocation5 + $0x30] sm:$0xff]   ;;  %v1042_v47 = vld [vmem:[#allocation5 + $0x48] sm:$0xff]   ;;  %v1043_v48 = vld [vmem:[#allocation5 + $0x40] sm:$0xff]   ;;  %s1142_s9 = scalar_lea.vmem %s752_s28, 128  ;;  %p1471_p3 = scmp.ne.s32.totalorder %s1465_s22, 0 }
  0x5a   : > { %v864_v49 = vld [vmem:[#allocation7 + $0x3] ss:$0 sm:$0xff]  ;;  %v1044_v61 = vld [vmem:[#allocation5 + $0x58] sm:$0xff]   ;;  %v868_v63 = vld [vmem:[#allocation7 + $0x4] ss:$0 sm:$0xff]  ;;  %p1143_p8 = scmp.ne.s32.totalorder %s752_s28, %s1142_s9  ;;  %s1221_s11 = smov [#allocation8]  }
  0x5b   : > { %v1045_v62 = vld [vmem:[#allocation5 + $0x50] sm:$0xff]   ;;  %s1146_s16 = sshll.u32 %s1221_s11, 4  ;;  %s1147_s16 = int_to_ptr.vmem [resolvable:$false] %s1146_s16 }
  0x5c   : > { %908 = vmatpush3.bf16.msra.mxu0 %v1035_v2  ;;  %916 = vmatpush3.bf16.msra.mxu1 %v1037_v6  ;;  %p1144_p10 = pnand %p1143_p8, %p1471_p3  ;;  %s1148_s17 = scalar_lea.vmem %s1147_s16, 256 }
  0x5d   : > { %921 = vmatprep.subr.bf16.mxu0 %v1219_v0  ;;  %929 = vmatprep.subr.bf16.mxu1 %v1219_v0  ;;  %p1149_p12 = scmp.lt.s32.totalorder %s752_s28, %s1147_s16  ;;  %p1150_p13 = scmp.lt.s32.totalorder %s1148_s17, %s1142_s9 }
  0x5e   : > { %p1145_p7 = pneg %p1144_p10 }
  0x5f   : > { %910 = vmatmul.mubr.msk.bf16.vlgmr.msra.gmra.mxu0 %vm241_vm1, %v217_v4  ;;  %p1151_p0 = por %p1150_p13, %p1149_p12 }
  0x60   : > { %925 = vmatprep.mubr.msk.bf16.mxu0 %vm1220_vm0, %v1219_v0  ;;  %922 = vmatpush3.bf16.msra.mxu0 %v1038_v19 }
  0x61   : > { %923 = vmatprep.subr.bf16.mxu0 %v1219_v0  ;;  %p1152_p5 = pnand %p1151_p0, %p1145_p7 }
  0x64   : > { %924 = vmatpush3.bf16.msra.mxu0 %v1039_v20 }
  0x65   : > { %937 = vmatprep.subr.bf16.mxu0 %v1219_v0 }
 0x11f   : > { %v279_v8 = vpop.f32.mrf.mxu0 }
 0x120   : > { %v280_v9 = vadd.f32 %v852_v7, %v279_v8 }
 0x121   : > { %v911_v10 = vpop.f32.mrf.mxu0 }
 0x122   : > { %v285_v11 = vmul.f32 0.5, %v280_v9 }
 0x123   : > { %v282_v12 = vpop.f32.mrf.mxu0 }
 0x124   : > { %1048 = vtanh.f32 %v285_v11  ;;  %v1046_v12 = vld [vmem:[#allocation5 + $0x68] sm:$0xff]  }
 0x125   : > { %v912_v13 = vpop.f32.mrf.mxu0 }
 0x126   : > { %v1047_v13 = vld [vmem:[#allocation5 + $0x60] sm:$0xff]  }
 0x131   : > { %v1049_v14 = vpop.eup %1048 }
 0x132   : > { %v287_v15 = vmul.f32 0.5, %v1049_v14  ;;  %v872_v14 = vld [vmem:[#allocation7 + $0x5] ss:$0 sm:$0xff] }
 0x134   : > { %v288_v16 = vadd.f32 0.5, %v287_v15 }
 0x136   : > { %v289_v17 = vpack.c.bf16 %v288_v16, %v288_v16 }
 0x138   : > { %v290_v18 = vmul.bf16 %v289_v17, %v217_v4 }
 0x13a   : > { %918 = vmatmul.mubr.msk.bf16.vlgmr.msra.gmra.mxu1 %vm241_vm1, %v290_v18 }
 0x13b   : > { %933 = vmatprep.mubr.msk.bf16.mxu1 %vm1220_vm0, %v1219_v0  ;;  %930 = vmatpush3.bf16.msra.mxu1 %v1040_v33 }
 0x13c   : > { %931 = vmatprep.subr.bf16.mxu1 %v1219_v0 }
 0x13f   : > { %932 = vmatpush3.bf16.msra.mxu1 %v1041_v34 }
 0x140   : > { %945 = vmatprep.subr.bf16.mxu1 %v1219_v0 }
 0x1fa   : > { %v353_v22 = vpop.f32.mrf.mxu1 }
 0x1fb   : > { %v354_v23 = vadd.f32 %v856_v21, %v353_v22 }
 0x1fc   : > { %v919_v24 = vpop.f32.mrf.mxu1 }
 0x1fd   : > { %v359_v25 = vmul.f32 0.5, %v354_v23 }
 0x1fe   : > { %v356_v26 = vpop.f32.mrf.mxu1 }
 0x1ff   : > { %1050 = vtanh.f32 %v359_v25 }
 0x200   : > { %v920_v27 = vpop.f32.mrf.mxu1 }
 0x20c   : > { %v1051_v28 = vpop.eup %1050 }
 0x20d   : > { %v361_v29 = vmul.f32 0.5, %v1051_v28 }
 0x20f   : > { %v362_v30 = vadd.f32 0.5, %v361_v29 }
 0x211   : > { %v363_v31 = vpack.c.bf16 %v362_v30, %v362_v30 }
 0x213   : > { %v364_v32 = vmul.bf16 %v363_v31, %v290_v18 }
 0x215   : > { %926 = vmatmul.mubr.msk.bf16.vlgmr.msra.gmra.mxu0 %vm241_vm1, %v364_v32 }
 0x216   : > { %941 = vmatprep.mubr.msk.bf16.mxu0 %vm1220_vm0, %v1219_v0  ;;  %938 = vmatpush3.bf16.msra.mxu0 %v1042_v47 }
 0x217   : > { %939 = vmatprep.subr.bf16.mxu0 %v1219_v0 }
 0x21a   : > { %940 = vmatpush3.bf16.msra.mxu0 %v1043_v48 }
 0x21b   : > { %953 = vmatprep.subr.bf16.mxu0 %v1219_v0 }
 0x2d5   : > { %v427_v36 = vpop.f32.mrf.mxu0 }
 0x2d6   : > { %v428_v37 = vadd.f32 %v860_v35, %v427_v36 }
 0x2d7   : > { %v927_v38 = vpop.f32.mrf.mxu0 }
 0x2d8   : > { %v433_v39 = vmul.f32 0.5, %v428_v37 }
 0x2d9   : > { %v430_v40 = vpop.f32.mrf.mxu0 }
 0x2da   : > { %1052 = vtanh.f32 %v433_v39 }
 0x2db   : > { %v928_v41 = vpop.f32.mrf.mxu0 }
 0x2e7   : > { %v1053_v42 = vpop.eup %1052 }
 0x2e8   : > { %v435_v43 = vmul.f32 0.5, %v1053_v42 }
 0x2ea   : > { %v436_v44 = vadd.f32 0.5, %v435_v43 }
 0x2ec   : > { %v437_v45 = vpack.c.bf16 %v436_v44, %v436_v44 }
 0x2ee   : > { %v438_v46 = vmul.bf16 %v437_v45, %v364_v32 }
 0x2f0   : > { %934 = vmatmul.mubr.msk.bf16.vlgmr.msra.gmra.mxu1 %vm241_vm1, %v438_v46 }
 0x2f1   : > { %949 = vmatprep.mubr.msk.bf16.mxu1 %vm1220_vm0, %v1219_v0  ;;  %946 = vmatpush3.bf16.msra.mxu1 %v1044_v61 }
 0x2f2   : > { %947 = vmatprep.subr.bf16.mxu1 %v1219_v0 }
 0x2f5   : > { %948 = vmatpush3.bf16.msra.mxu1 %v1045_v62 }
 0x3b0   : > { %v501_v50 = vpop.f32.mrf.mxu1 }
 0x3b1   : > { %v502_v51 = vadd.f32 %v864_v49, %v501_v50 }
 0x3b2   : > { %v935_v52 = vpop.f32.mrf.mxu1 }
 0x3b3   : > { %v507_v53 = vmul.f32 0.5, %v502_v51 }
 0x3b4   : > { %v504_v54 = vpop.f32.mrf.mxu1 }
 0x3b5   : > { %1054 = vtanh.f32 %v507_v53 }
 0x3b6   : > { %v936_v55 = vpop.f32.mrf.mxu1 }
 0x3c2   : > { %v1055_v56 = vpop.eup %1054 }
 0x3c3   : > { %v509_v57 = vmul.f32 0.5, %v1055_v56 }
 0x3c5   : > { %v510_v58 = vadd.f32 0.5, %v509_v57 }
 0x3c7   : > { %v511_v59 = vpack.c.bf16 %v510_v58, %v510_v58 }
 0x3c9   : > { %v512_v60 = vmul.bf16 %v511_v59, %v438_v46 }
 0x3cb   : > { %942 = vmatmul.mubr.msk.bf16.vlgmr.msra.gmra.mxu0 %vm241_vm1, %v512_v60 }
 0x3cc   : > { %957 = vmatprep.mubr.msk.bf16.mxu0 %vm1220_vm0, %v1219_v0  ;;  %954 = vmatpush3.bf16.msra.mxu0 %v1046_v12 }
 0x3cd   : > { %955 = vmatprep.subr.bf16.mxu0 %v1219_v0  ;;  %v876_v0 = vld [vmem:[#allocation7 + $0x6] ss:$0 sm:$0xff] }
 0x3d0   : > { %956 = vmatpush3.bf16.msra.mxu0 %v1047_v13 }
 0x48b   : > { %v575_v1 = vpop.f32.mrf.mxu0 }
 0x48c   : > { %v576_v2 = vadd.f32 %v868_v63, %v575_v1 }
 0x48d   : > { %v943_v3 = vpop.f32.mrf.mxu0 }
 0x48e   : > { %v581_v4 = vmul.f32 0.5, %v576_v2 }
 0x48f   : > { %v578_v5 = vpop.f32.mrf.mxu0 }
 0x490   : > { %1056 = vtanh.f32 %v581_v4 }
 0x491   : > { %v944_v6 = vpop.f32.mrf.mxu0 }
 0x49d   : > { %v1057_v7 = vpop.eup %1056 }
 0x49e   : > { %v583_v8 = vmul.f32 0.5, %v1057_v7 }
 0x4a0   : > { %v584_v9 = vadd.f32 0.5, %v583_v8 }
 0x4a2   : > { %v585_v10 = vpack.c.bf16 %v584_v9, %v584_v9 }
 0x4a4   : > { %v586_v11 = vmul.bf16 %v585_v10, %v512_v60 }
 0x4a6   : > { %950 = vmatmul.mubr.msk.bf16.vlgmr.msra.gmra.mxu1 %vm241_vm1, %v586_v11 }
 0x566   : > { %v649_v15 = vpop.f32.mrf.mxu1 }
 0x567   : > { %v650_v16 = vadd.f32 %v872_v14, %v649_v15 }
 0x568   : > { %v951_v17 = vpop.f32.mrf.mxu1 }
 0x569   : > { %v655_v18 = vmul.f32 0.5, %v650_v16 }
 0x56a   : > { %v652_v19 = vpop.f32.mrf.mxu1 }
 0x56b   : > { %1058 = vtanh.f32 %v655_v18 }
 0x56c   : > { %v952_v20 = vpop.f32.mrf.mxu1 }
 0x578   : > { %v1059_v21 = vpop.eup %1058 }
 0x579   : > { %v657_v22 = vmul.f32 0.5, %v1059_v21 }
 0x57b   : > { %v658_v23 = vadd.f32 0.5, %v657_v22 }
 0x57d   : > { %v659_v24 = vpack.c.bf16 %v658_v23, %v658_v23 }
 0x57f   : > { %v660_v25 = vmul.bf16 %v659_v24, %v586_v11 }
 0x581   : > { %958 = vmatmul.mubr.msk.bf16.vlgmr.msra.gmra.mxu0 %vm241_vm1, %v660_v25 }
 0x641   : > { %v723_v26 = vpop.f32.mrf.mxu0 }
 0x642   : > { %v724_v27 = vadd.f32 %v876_v0, %v723_v26 }
 0x643   : > { %v959_v28 = vpop.f32.mrf.mxu0 }
 0x644   : > { %v729_v29 = vmul.f32 0.5, %v724_v27 }
 0x645   : > { %v726_v30 = vpop.f32.mrf.mxu0 }
 0x646   : > { %1060 = vtanh.f32 %v729_v29 }
 0x647   : > { %v960_v31 = vpop.f32.mrf.mxu0 }
 0x653   : > { %v1061_v32 = vpop.eup %1060 }
 0x654   : > { %v731_v33 = vmul.f32 0.5, %v1061_v32 }
 0x656   : > { %v732_v34 = vadd.f32 0.5, %v731_v33 }
 0x658   : > { %v733_v35 = vpack.c.bf16 %v732_v34, %v732_v34 }
 0x65a   : > { %v734_v36 = vmul.bf16 %v733_v35, %v660_v25 }
 0x65c   : > { %v735_v37 = vunpack.c.l.bf16 %v734_v36 }
 0x65e   : > { %736 = vst.msk [vmem:[%s214_s20] sm:$0xff] %vm241_vm1, %v735_v37 }
 0x65f   : > { %1155 = shalt.err (!%p1152_p5)
}
 0x660   : > { %s1156_s24 = scalar_lea.hbm %s749_s5, 128  ;;  %s1160_s26 = scalar_lea.hbm %s1456_s3, 512 }
 0x661   : > { %p1157_p2 = scmp.ne.s32.totalorder %s749_s5, %s1156_s24  ;;  %p1161_p1 = scmp.lt.s32.totalorder %s749_s5, %s1456_s3 }
 0x662   : > { %p1162_p4 = scmp.lt.s32.totalorder %s1160_s26, %s1156_s24 }
 0x663   : > { %p1158_p9 = pnand %p1157_p2, %p1471_p3 }
 0x664   : > { %p1163_p6 = por %p1162_p4, %p1161_p1 }
 0x665   : > { %p1159_p11 = pneg %p1158_p9 }
 0x667   : > { %p1164_p8 = pnand %p1163_p6, %p1159_p11 }
 0x669   : > { %1167 = shalt.err (!%p1164_p8)
}
 0x66a   : > { %971 = dma.vmem_to_hbm [thread:$0]  (%p1471_p3), %s752_s28, 128, %s749_s5, %s738_s8  }
 0x66b PF: > { %p993_p10 = scmp.ge.s32.totalorder %s1210_s15, 2  ;;  %s763_s6 = sand.u32 1, %s1198_s12  }
 0x66c   : > { %p1472_p7 = scmp.ne.s32.totalorder %s1462_s19, 0  ;;  %s764_s7 = scalar_lea.sflag [#allocation4], %s763_s6 }
 0x66e   : > { %p985_p12 = pnand %p993_p10, %p1472_p7 }
 0x670   : > { %p986_p13 = pneg %p985_p12 }
 0x672   : > { %1193 = dma.done.wait (%p986_p13), %s764_s7, 128  }
 0x673   : > { %1195 = vsyncadd (%p986_p13), %s764_s7, 4294967168  ;;  %p17_p0 = scmp.ge.s32.totalorder %s1321_s10, 6   ;;  %s1473_s12 = smov %s1202_s13 }
 0x674   : > { %s1474_s13 = smov %s1206_s14  ;;  %s1475_s14 = smov %s1330_s21 }
 0x675   : > { %s1476_s15 = smov %s1321_s10  ;;  %19 = sbr.rel (!%p17_p0) target bundleno = 6 (0x6), region = 97 }
 0x67a   :  { %769 = vsyncpa [#allocation3], 1 }
 0x67b   :  { %771 = vsyncpa [#allocation3 + $0x1], 1 }
 0x67c   :  { %772 = vsyncpa [#allocation6], 1 }
 0x67d   :  { %773 = vsyncpa [#allocation4], 1 }
 0x67e   :  { %775 = vsyncpa [#allocation4 + $0x1], 1 }

</bundles_post_ra>
